<compile_context>
chip_gen: v7x
topology: tpu7x:2x2x1
jax: 0.10.0
libtpu: 0.0.40
codegen_flags: <defaults>
</compile_context>

<pallas_src>
import math
import numpy as np

import jax
import jax.numpy as jnp
from jax import lax
from jax.experimental import pallas as pl
from jax.experimental.pallas import tpu as pltpu

EPS = float(np.finfo(float).eps)   # matches np.finfo(float).eps in the torch code
BN_EPS = 1e-5
P = 128                            # lane width; every weight block is zero-padded to (P, P)


def _elu(z):
    # exp() only on the non-positive branch: no inf in the discarded lane, one EUP op cheaper.
    return jnp.where(z > 0, z, jnp.exp(jnp.minimum(z, 0.0)) - 1.0)


def graphnet_kernel(x_ref, w_ref, v_ref, out_ref):
    f32 = jnp.float32
    x = x_ref[...]                                  # (N, d), d == P
    N, d = x.shape

    # ---------------- packed parameters ----------------
    # w_ref: 7 stacked (P,P) blocks: rw1, rw2, gw1, gw2, mw1', mw2', mw3 (BN folded into mw*').
    # Zero padding is semantically inert: relu(0)=0, elu(0)=0 and padded weight rows are zero.
    def wblk(i):
        return w_ref[i * P:(i + 1) * P, :]

    rw1, rw2, gw1, gw2, mw1, mw2, mw3 = (wblk(i) for i in range(7))

    v = v_ref[...]                                  # (8, P) — exactly one vreg tile
    rb1, rb2, rw3 = v[0:1, :], v[1:2, :], v[2:3, :]
    rb3 = v[3:4, 0:1]
    gb1, gb2 = v[4:5, :], v[5:6, :]
    mb1, mb2 = v[6:7, :], v[7:8, :]                 # already BN-folded

    # ---------------- RelationNetwork: sigma = fc3(relu(fc2(relu(fc1(x))))) ----------------
    h = jnp.maximum(jnp.dot(x, rw1, preferred_element_type=f32) + rb1, 0.0)
    h = jnp.maximum(jnp.dot(h, rw2, preferred_element_type=f32) + rb2, 0.0)
    # fc3 has one output unit: lane reduction against the rw3 row.
    sigma = jnp.sum(h * rw3, axis=1, keepdims=True) + rb3          # (N, 1)

    # ---------------- pairwise similarity W via the Gram identity (MXU, O(N^2) memory) --------
    emb = x / (sigma + EPS)                                        # (N, d)
    gram = lax.dot_general(emb, emb, (((1,), (1,)), ((), ())),
                           preferred_element_type=f32)             # emb @ emb.T, (N, N)
    sq = jnp.sum(emb * emb, axis=1, keepdims=True)                 # (N, 1)
    sq_t = jnp.transpose(jnp.broadcast_to(sq, (N, N)))             # (N, N) with entry (i,j)=sq_j
    dist = jnp.maximum(sq + sq_t - 2.0 * gram, 0.0) * (1.0 / d)    # mean squared diff
    W = jnp.exp(-0.5 * dist)                                       # (N, N)

    # ---------------- top-3 per row -> scatter mask; symmetrize ----------------
    # Kept as 3 static passes (2 single-vreg XLU reduces each): O(N^2) memory and negligible at
    # N=8; the "single sweep" alternatives either serialize over lanes or need an O(N^3) rank
    # tensor, which scales worse than the Gram rewrite just removed.
    col_ids = lax.broadcasted_iota(jnp.int32, (N, N), 1).astype(f32)
    w_work = W
    mask = jnp.zeros((N, N), f32)
    for _ in range(3):                               # torch.topk(W, 3); lowest index wins ties
        row_max = jnp.max(w_work, axis=1, keepdims=True)
        is_max = w_work == row_max
        idx = jnp.min(jnp.where(is_max, col_ids, float(N)), axis=1, keepdims=True)
        sel = col_ids == idx
        mask = jnp.where(sel, 1.0, mask)
        w_work = jnp.where(sel, -jnp.inf, w_work)

    # XLU transpose (idle slot) instead of an eye-matmul on the MXU.
    adj = jnp.where(mask + jnp.transpose(mask) > 0.0, 1.0, 0.0)    # binary symmetric adjacency

    # ---------------- dgl GraphConv(norm='both'): D^-1/2 A D^-1/2 ----------------
    deg_r = jnp.maximum(jnp.sum(adj, axis=1, keepdims=True), 1.0)  # (N, 1)
    deg_c = jnp.maximum(jnp.sum(adj, axis=0, keepdims=True), 1.0)  # (1, N)
    a_hat = lax.rsqrt(deg_r) * adj * lax.rsqrt(deg_c)              # (N, N)

    # ---------------- GCN: two GraphConv layers (elu) + residual ----------------
    # TODO(synk): nn.Dropout(0.1) between the GraphConv layers is identity (eval mode).
    h1 = _elu(jnp.dot(jnp.dot(a_hat, x, preferred_element_type=f32), gw1,
                      preferred_element_type=f32) + gb1)
    h2 = _elu(jnp.dot(jnp.dot(a_hat, h1, preferred_element_type=f32), gw2,
                      preferred_element_type=f32) + gb2)
    hg = h2 + x                                                    # residual

    # ---------------- MLP (BN + bias pre-folded into mw1/mw2/mb1/mb2; Dropout = identity) -----
    z = jnp.maximum(jnp.dot(hg, mw1, preferred_element_type=f32) + mb1, 0.0)
    z = jnp.maximum(jnp.dot(z, mw2, preferred_element_type=f32) + mb2, 0.0)
    out_ref[...] = jnp.dot(z, mw3, preferred_element_type=f32)


# ----------------------------------------------------------------------------------------------
# Host-side parameter construction / folding / packing
# ----------------------------------------------------------------------------------------------
def init_params(key, d, hidden_dim):
    """Deterministic synthetic parameters (shapes follow the torch __init__)."""
    r_h1 = d // 8
    r_h2 = r_h1 // 4
    ks = list(jax.random.split(key, 16))

    def u(k, shape, fan_in):
        b = 1.0 / math.sqrt(fan_in)
        return jax.random.uniform(k, shape, jnp.float32, -b, b)

    # RelationNetwork
    rw1 = u(ks[0], (d, r_h1), d);        rb1 = u(ks[1], (1, r_h1), d)
    rw2 = u(ks[2], (r_h1, r_h2), r_h1);  rb2 = u(ks[3], (1, r_h2), r_h1)
    rw3 = u(ks[4], (1, r_h2), r_h2);     rb3 = u(ks[5], (1, 1), r_h2)   # fc3 stored as a row

    # GCN GraphConv weights (bias initialized to zero, as in dgl)
    gw1 = u(ks[6], (d, hidden_dim), d)
    gb1 = jnp.zeros((1, hidden_dim), jnp.float32)
    gw2 = u(ks[7], (hidden_dim, d), hidden_dim)
    gb2 = jnp.zeros((1, d), jnp.float32)

    # MLP
    mw1 = u(ks[8], (d, hidden_dim), d);           mb1 = u(ks[9], (1, hidden_dim), d)
    mw2 = u(ks[10], (hidden_dim, d), hidden_dim); mb2 = u(ks[11], (1, d), hidden_dim)
    kb = math.sqrt(6.0 / d)                       # kaiming_uniform(fan_in, relu), no bias
    mw3 = jax.random.uniform(ks[12], (d, d), jnp.float32, -kb, kb)

    # BatchNorm1d eval: gamma=1, beta=0, running_mean=0, running_var=1 -> scale/shift
    bn1_scale = jnp.full((1, hidden_dim), 1.0 / math.sqrt(1.0 + BN_EPS), jnp.float32)
    bn1_shift = jnp.zeros((1, hidden_dim), jnp.float32)
    bn2_scale = jnp.full((1, d), 1.0 / math.sqrt(1.0 + BN_EPS), jnp.float32)
    bn2_shift = jnp.zeros((1, d), jnp.float32)

    return (rw1, rb1, rw2, rb2, rw3, rb3,
            gw1, gb1, gw2, gb2,
            mw1, mb1, bn1_scale, bn1_shift,
            mw2, mb2, bn2_scale, bn2_shift,
            mw3)


def pack_params(params, d, hidden_dim):
    """Fold eval-mode BN into the MLP Linears and pack everything into two VMEM slabs."""
    (rw1, rb1, rw2, rb2, rw3, rb3,
     gw1, gb1, gw2, gb2,
     mw1, mb1, bn1s, bn1b,
     mw2, mb2, bn2s, bn2b,
     mw3) = params

    assert d == P and hidden_dim <= P and (d // 8) <= P, "packing assumes feature dims <= 128"

    def pad2(w):                       # zero-pad a weight to (P, P)
        r, c = w.shape
        return jnp.pad(w, ((0, P - r), (0, P - c)))

    def padrow(v):                     # zero-pad a (1, K) row vector to (1, P)
        return jnp.pad(v, ((0, 0), (0, P - v.shape[1])))

    # Fold BatchNorm1d (eval) into the adjacent Linear: W' = W*s, b' = b*s + shift.
    mw1f = mw1 * bn1s
    mb1f = mb1 * bn1s + bn1b
    mw2f = mw2 * bn2s
    mb2f = mb2 * bn2s + bn2b

    w_slab = jnp.concatenate(
        [pad2(rw1), pad2(rw2), pad2(gw1), pad2(gw2), pad2(mw1f), pad2(mw2f), pad2(mw3)],
        axis=0).astype(jnp.float32)                               # (7*P, P)

    v_slab = jnp.concatenate(
        [padrow(rb1), padrow(rb2), padrow(rw3),
         jnp.broadcast_to(rb3, (1, P)),
         padrow(gb1), padrow(gb2), padrow(mb1f), padrow(mb2f)],
        axis=0).astype(jnp.float32)                               # (8, P) — one vreg tile

    return w_slab, v_slab


# ----------------------------------------------------------------------------------------------
# Pallas wrapper: one grid step per graph, graphs sharded across TensorCores ("parallel").
# ----------------------------------------------------------------------------------------------
def graphnet_forward(x, w_slab, v_slab):
    single = x.ndim == 2
    if single:
        x = x[None]
    B, N, d = x.shape

    out = pl.pallas_call(
        graphnet_kernel,
        out_shape=jax.ShapeDtypeStruct((B, N, d), jnp.float32),
        grid=(B,),
        in_specs=[
            pl.BlockSpec((None, N, d), lambda b: (b, 0, 0)),         # per-graph node features
            pl.BlockSpec(w_slab.shape, lambda b: (0, 0)),            # weight slab, resident
            pl.BlockSpec(v_slab.shape, lambda b: (0, 0)),            # bias/vector slab, resident
        ],
        out_specs=pl.BlockSpec((None, N, d), lambda b: (b, 0, 0)),
        compiler_params=pltpu.CompilerParams(dimension_semantics=("parallel",)),
    )(x, w_slab, v_slab)

    return out[0] if single else out


# ----------------------------------------------------------------------------------------------
# Pure-JAX reference (faithful broadcasted-diff / explicit-BN formulation)
# ----------------------------------------------------------------------------------------------
def graphnet_reference(x, params):
    (rw1, rb1, rw2, rb2, rw3, rb3,
     gw1, gb1, gw2, gb2,
     mw1, mb1, bn1s, bn1b,
     mw2, mb2, bn2s, bn2b,
     mw3) = params
    HI = lax.Precision.HIGHEST

    def one(xg):
        N, d = xg.shape
        h = jax.nn.relu(jnp.dot(xg, rw1, precision=HI) + rb1)
        h = jax.nn.relu(jnp.dot(h, rw2, precision=HI) + rb2)
        sigma = jnp.sum(h * rw3, axis=1, keepdims=True) + rb3
        emb = xg / (sigma + EPS)
        diff = emb[:, None, :] - emb[None, :, :]
        W = jnp.exp(-jnp.mean(diff * diff, axis=2) / 2.0)
        _, idx = lax.top_k(W, 3)
        mask = jnp.zeros((N, N), jnp.float32).at[jnp.arange(N)[:, None], idx].set(1.0)
        adj = ((mask + mask.T) > 0).astype(jnp.float32)
        deg_r = jnp.maximum(adj.sum(1, keepdims=True), 1.0)
        deg_c = jnp.maximum(adj.sum(0, keepdims=True), 1.0)
        a_hat = adj / jnp.sqrt(deg_r) / jnp.sqrt(deg_c)
        h1 = jax.nn.elu(jnp.dot(jnp.dot(a_hat, xg, precision=HI), gw1, precision=HI) + gb1)
        h2 = jax.nn.elu(jnp.dot(jnp.dot(a_hat, h1, precision=HI), gw2, precision=HI) + gb2)
        hg = h2 + xg
        z = jax.nn.relu((jnp.dot(hg, mw1, precision=HI) + mb1) * bn1s + bn1b)
        z = jax.nn.relu((jnp.dot(z, mw2, precision=HI) + mb2) * bn2s + bn2b)
        return jnp.dot(z, mw3, precision=HI)

    return jax.vmap(one)(x)


if __name__ == "__main__":
    # GraphNet(input_size=128, output_size=128, hidden_dim=32); B=4 graphs of N=8 nodes each.
    # (output_size must equal input_size for the `h + features` residual in GCN.)
    B, N, d = 4, 8, 128
    hidden_dim = 32

    key = jax.random.PRNGKey(0)
    kx, kp = jax.random.split(key)
    x = jax.random.normal(kx, (B, N, d), jnp.float32)
    params = init_params(kp, d, hidden_dim)
    w_slab, v_slab = pack_params(params, d, hidden_dim)

    fwd = jax.jit(graphnet_forward)
    out = fwd(x, w_slab, v_slab)
    jax.block_until_ready(out)

    assert out.shape == (B, N, d) and out.dtype == jnp.float32
    assert bool(jnp.all(jnp.isfinite(out)))

    ref = graphnet_reference(x, params)
    np.testing.assert_allclose(np.asarray(out), np.asarray(ref), rtol=2e-3, atol=2e-3)

    print("KERNEL_OK")
</pallas_src>

<mosaic_0001>
module attributes {stable_mosaic.version = 11 : i64} {
  func.func @graphnet_kernel(%arg0: i32, %arg1: memref<1x8x128xf32, #tpu.memory_space<vmem>>, %arg2: memref<896x128xf32, #tpu.memory_space<vmem>>, %arg3: memref<8x128xf32, #tpu.memory_space<vmem>>, %arg4: memref<1x8x128xf32, #tpu.memory_space<vmem>>) attributes {dimension_semantics = [#tpu.dimension_semantics<parallel>], iteration_bounds = array<i64: 4>, scalar_prefetch = 0 : i64, scratch_operands = 0 : i64, tpu.core_type = #tpu.core_type<tc>, window_params = [{transform_indices = @transform_0, window_bounds = array<i64: 1, 8, 128>}, {pipeline_mode = #tpu.pipeline_mode<synchronous>, transform_indices = @transform_1, window_bounds = array<i64: 896, 128>}, {pipeline_mode = #tpu.pipeline_mode<synchronous>, transform_indices = @transform_2, window_bounds = array<i64: 8, 128>}, {transform_indices = @transform_3, window_bounds = array<i64: 1, 8, 128>}]} {
    %c0 = arith.constant 0 : index
    %c0_0 = arith.constant 0 : index
    %c0_1 = arith.constant 0 : index
    %0 = vector.load %arg1[%c0, %c0_0, %c0_1] : memref<1x8x128xf32, #tpu.memory_space<vmem>>, vector<1x8x128xf32>
    %1 = vector.shape_cast %0 : vector<1x8x128xf32> to vector<8x128xf32>
    %c0_2 = arith.constant 0 : index
    %c0_3 = arith.constant 0 : index
    %2 = vector.load %arg2[%c0_2, %c0_3] : memref<896x128xf32, #tpu.memory_space<vmem>>, vector<128x128xf32>
    %c128 = arith.constant 128 : index
    %c0_4 = arith.constant 0 : index
    %3 = vector.load %arg2[%c128, %c0_4] : memref<896x128xf32, #tpu.memory_space<vmem>>, vector<128x128xf32>
    %c256 = arith.constant 256 : index
    %c0_5 = arith.constant 0 : index
    %4 = vector.load %arg2[%c256, %c0_5] : memref<896x128xf32, #tpu.memory_space<vmem>>, vector<128x128xf32>
    %c384 = arith.constant 384 : index
    %c0_6 = arith.constant 0 : index
    %5 = vector.load %arg2[%c384, %c0_6] : memref<896x128xf32, #tpu.memory_space<vmem>>, vector<128x128xf32>
    %c512 = arith.constant 512 : index
    %c0_7 = arith.constant 0 : index
    %6 = vector.load %arg2[%c512, %c0_7] : memref<896x128xf32, #tpu.memory_space<vmem>>, vector<128x128xf32>
    %c640 = arith.constant 640 : index
    %c0_8 = arith.constant 0 : index
    %7 = vector.load %arg2[%c640, %c0_8] : memref<896x128xf32, #tpu.memory_space<vmem>>, vector<128x128xf32>
    %c768 = arith.constant 768 : index
    %c0_9 = arith.constant 0 : index
    %8 = vector.load %arg2[%c768, %c0_9] : memref<896x128xf32, #tpu.memory_space<vmem>>, vector<128x128xf32>
    %c0_10 = arith.constant 0 : index
    %c0_11 = arith.constant 0 : index
    %9 = vector.load %arg3[%c0_10, %c0_11] : memref<8x128xf32, #tpu.memory_space<vmem>>, vector<8x128xf32>
    %10 = vector.extract_strided_slice %9 {offsets = [0, 0], sizes = [1, 128], strides = [1, 1]} : vector<8x128xf32> to vector<1x128xf32>
    %11 = vector.extract_strided_slice %9 {offsets = [1, 0], sizes = [1, 128], strides = [1, 1]} : vector<8x128xf32> to vector<1x128xf32>
    %12 = vector.extract_strided_slice %9 {offsets = [2, 0], sizes = [1, 128], strides = [1, 1]} : vector<8x128xf32> to vector<1x128xf32>
    %13 = vector.extract_strided_slice %9 {offsets = [3, 0], sizes = [1, 1], strides = [1, 1]} : vector<8x128xf32> to vector<1x1xf32>
    %14 = vector.extract_strided_slice %9 {offsets = [4, 0], sizes = [1, 128], strides = [1, 1]} : vector<8x128xf32> to vector<1x128xf32>
    %15 = vector.extract_strided_slice %9 {offsets = [5, 0], sizes = [1, 128], strides = [1, 1]} : vector<8x128xf32> to vector<1x128xf32>
    %16 = vector.extract_strided_slice %9 {offsets = [6, 0], sizes = [1, 128], strides = [1, 1]} : vector<8x128xf32> to vector<1x128xf32>
    %17 = vector.extract_strided_slice %9 {offsets = [7, 0], sizes = [1, 128], strides = [1, 1]} : vector<8x128xf32> to vector<1x128xf32>
    %cst = arith.constant dense<0.000000e+00> : vector<8x128xf32>
    %18 = tpu.matmul %1, %2, %cst {dimension_numbers = #tpu.dot_dimension_numbers<[1], [0], [0], [1], [0, 0, 1, 1], [], []>} : vector<8x128xf32>, vector<128x128xf32>, vector<8x128xf32> -> vector<8x128xf32>
    %19 = vector.broadcast %10 : vector<1x128xf32> to vector<8x128xf32>
    %20 = arith.addf %18, %19 : vector<8x128xf32>
    %cst_12 = arith.constant 0.000000e+00 : f32
    %21 = vector.broadcast %cst_12 : f32 to vector<8x128xf32>
    %22 = arith.maximumf %20, %21 : vector<8x128xf32>
    %cst_13 = arith.constant dense<0.000000e+00> : vector<8x128xf32>
    %23 = tpu.matmul %22, %3, %cst_13 {dimension_numbers = #tpu.dot_dimension_numbers<[1], [0], [0], [1], [0, 0, 1, 1], [], []>} : vector<8x128xf32>, vector<128x128xf32>, vector<8x128xf32> -> vector<8x128xf32>
    %24 = vector.broadcast %11 : vector<1x128xf32> to vector<8x128xf32>
    %25 = arith.addf %23, %24 : vector<8x128xf32>
    %cst_14 = arith.constant 0.000000e+00 : f32
    %26 = vector.broadcast %cst_14 : f32 to vector<8x128xf32>
    %27 = arith.maximumf %25, %26 : vector<8x128xf32>
    %28 = vector.broadcast %12 : vector<1x128xf32> to vector<8x128xf32>
    %29 = arith.mulf %27, %28 : vector<8x128xf32>
    %cst_15 = arith.constant dense<0.000000e+00> : vector<8xf32>
    %30 = vector.multi_reduction <add>, %29, %cst_15 [1] : vector<8x128xf32> to vector<8xf32>
    %31 = vector.shape_cast %30 : vector<8xf32> to vector<8x1xf32>
    %32 = vector.broadcast %13 : vector<1x1xf32> to vector<8x1xf32>
    %33 = arith.addf %31, %32 : vector<8x1xf32>
    %cst_16 = arith.constant 2.22044605E-16 : f32
    %34 = vector.broadcast %cst_16 : f32 to vector<8x1xf32>
    %35 = arith.addf %33, %34 : vector<8x1xf32>
    %36 = vector.broadcast %35 : vector<8x1xf32> to vector<8x128xf32>
    %37 = arith.divf %1, %36 : vector<8x128xf32>
    %cst_17 = arith.constant dense<0.000000e+00> : vector<8x8xf32>
    %38 = tpu.matmul %37, %37, %cst_17 {dimension_numbers = #tpu.dot_dimension_numbers<[1], [1], [0], [0], [0, 0, 1, 0], [], []>} : vector<8x128xf32>, vector<8x128xf32>, vector<8x8xf32> -> vector<8x8xf32>
    %39 = arith.mulf %37, %37 : vector<8x128xf32>
    %cst_18 = arith.constant dense<0.000000e+00> : vector<8xf32>
    %40 = vector.multi_reduction <add>, %39, %cst_18 [1] : vector<8x128xf32> to vector<8xf32>
    %41 = vector.shape_cast %40 : vector<8xf32> to vector<8x1xf32>
    %42 = vector.shape_cast %41 : vector<8x1xf32> to vector<8x1xf32>
    %43 = vector.broadcast %42 : vector<8x1xf32> to vector<8x8xf32>
    %44 = tpu.transpose %43, [1, 0] : vector<8x8xf32> -> vector<8x8xf32>
    %45 = vector.broadcast %41 : vector<8x1xf32> to vector<8x8xf32>
    %46 = arith.addf %45, %44 : vector<8x8xf32>
    %cst_19 = arith.constant 2.000000e+00 : f32
    %47 = vector.broadcast %cst_19 : f32 to vector<8x8xf32>
    %48 = arith.mulf %47, %38 : vector<8x8xf32>
    %49 = arith.subf %46, %48 : vector<8x8xf32>
    %cst_20 = arith.constant 0.000000e+00 : f32
    %50 = vector.broadcast %cst_20 : f32 to vector<8x8xf32>
    %51 = arith.maximumf %49, %50 : vector<8x8xf32>
    %cst_21 = arith.constant 7.812500e-03 : f32
    %52 = vector.broadcast %cst_21 : f32 to vector<8x8xf32>
    %53 = arith.mulf %51, %52 : vector<8x8xf32>
    %cst_22 = arith.constant -5.000000e-01 : f32
    %54 = vector.broadcast %cst_22 : f32 to vector<8x8xf32>
    %55 = arith.mulf %54, %53 : vector<8x8xf32>
    %56 = math.exp %55 : vector<8x8xf32>
    %57 = tpu.iota {dimensions = array<i32: 1>} : vector<8x8xi32>
    %58 = arith.sitofp %57 : vector<8x8xi32> to vector<8x8xf32>
    %cst_23 = arith.constant 0.000000e+00 : f32
    %59 = vector.broadcast %cst_23 : f32 to vector<8x8xf32>
    %cst_24 = arith.constant dense<0xFF800000> : vector<8xf32>
    %60 = vector.multi_reduction <maximumf>, %56, %cst_24 [1] : vector<8x8xf32> to vector<8xf32>
    %61 = vector.shape_cast %60 : vector<8xf32> to vector<8x1xf32>
    %62 = vector.broadcast %61 : vector<8x1xf32> to vector<8x8xf32>
    %63 = arith.cmpf oeq, %56, %62 : vector<8x8xf32>
    %cst_25 = arith.constant 8.000000e+00 : f32
    %64 = vector.broadcast %cst_25 : f32 to vector<8x8xf32>
    %65 = arith.select %63, %58, %64 : vector<8x8xi1>, vector<8x8xf32>
    %cst_26 = arith.constant dense<0x7F800000> : vector<8xf32>
    %66 = vector.multi_reduction <minimumf>, %65, %cst_26 [1] : vector<8x8xf32> to vector<8xf32>
    %67 = vector.shape_cast %66 : vector<8xf32> to vector<8x1xf32>
    %68 = vector.broadcast %67 : vector<8x1xf32> to vector<8x8xf32>
    %69 = arith.cmpf oeq, %58, %68 : vector<8x8xf32>
    %cst_27 = arith.constant 1.000000e+00 : f32
    %70 = vector.broadcast %cst_27 : f32 to vector<8x8xf32>
    %71 = arith.select %69, %70, %59 : vector<8x8xi1>, vector<8x8xf32>
    %cst_28 = arith.constant 0xFF800000 : f32
    %72 = vector.broadcast %cst_28 : f32 to vector<8x8xf32>
    %73 = arith.select %69, %72, %56 : vector<8x8xi1>, vector<8x8xf32>
    %cst_29 = arith.constant dense<0xFF800000> : vector<8xf32>
    %74 = vector.multi_reduction <maximumf>, %73, %cst_29 [1] : vector<8x8xf32> to vector<8xf32>
    %75 = vector.shape_cast %74 : vector<8xf32> to vector<8x1xf32>
    %76 = vector.broadcast %75 : vector<8x1xf32> to vector<8x8xf32>
    %77 = arith.cmpf oeq, %73, %76 : vector<8x8xf32>
    %cst_30 = arith.constant 8.000000e+00 : f32
    %78 = vector.broadcast %cst_30 : f32 to vector<8x8xf32>
    %79 = arith.select %77, %58, %78 : vector<8x8xi1>, vector<8x8xf32>
    %cst_31 = arith.constant dense<0x7F800000> : vector<8xf32>
    %80 = vector.multi_reduction <minimumf>, %79, %cst_31 [1] : vector<8x8xf32> to vector<8xf32>
    %81 = vector.shape_cast %80 : vector<8xf32> to vector<8x1xf32>
    %82 = vector.broadcast %81 : vector<8x1xf32> to vector<8x8xf32>
    %83 = arith.cmpf oeq, %58, %82 : vector<8x8xf32>
    %cst_32 = arith.constant 1.000000e+00 : f32
    %84 = vector.broadcast %cst_32 : f32 to vector<8x8xf32>
    %85 = arith.select %83, %84, %71 : vector<8x8xi1>, vector<8x8xf32>
    %cst_33 = arith.constant 0xFF800000 : f32
    %86 = vector.broadcast %cst_33 : f32 to vector<8x8xf32>
    %87 = arith.select %83, %86, %73 : vector<8x8xi1>, vector<8x8xf32>
    %cst_34 = arith.constant dense<0xFF800000> : vector<8xf32>
    %88 = vector.multi_reduction <maximumf>, %87, %cst_34 [1] : vector<8x8xf32> to vector<8xf32>
    %89 = vector.shape_cast %88 : vector<8xf32> to vector<8x1xf32>
    %90 = vector.broadcast %89 : vector<8x1xf32> to vector<8x8xf32>
    %91 = arith.cmpf oeq, %87, %90 : vector<8x8xf32>
    %cst_35 = arith.constant 8.000000e+00 : f32
    %92 = vector.broadcast %cst_35 : f32 to vector<8x8xf32>
    %93 = arith.select %91, %58, %92 : vector<8x8xi1>, vector<8x8xf32>
    %cst_36 = arith.constant dense<0x7F800000> : vector<8xf32>
    %94 = vector.multi_reduction <minimumf>, %93, %cst_36 [1] : vector<8x8xf32> to vector<8xf32>
    %95 = vector.shape_cast %94 : vector<8xf32> to vector<8x1xf32>
    %96 = vector.broadcast %95 : vector<8x1xf32> to vector<8x8xf32>
    %97 = arith.cmpf oeq, %58, %96 : vector<8x8xf32>
    %cst_37 = arith.constant 1.000000e+00 : f32
    %98 = vector.broadcast %cst_37 : f32 to vector<8x8xf32>
    %99 = arith.select %97, %98, %85 : vector<8x8xi1>, vector<8x8xf32>
    %100 = tpu.transpose %99, [1, 0] : vector<8x8xf32> -> vector<8x8xf32>
    %101 = arith.addf %99, %100 : vector<8x8xf32>
    %cst_38 = arith.constant 0.000000e+00 : f32
    %102 = vector.broadcast %cst_38 : f32 to vector<8x8xf32>
    %103 = arith.cmpf ogt, %101, %102 : vector<8x8xf32>
    %cst_39 = arith.constant 1.000000e+00 : f32
    %cst_40 = arith.constant 0.000000e+00 : f32
    %104 = vector.broadcast %cst_39 : f32 to vector<8x8xf32>
    %105 = vector.broadcast %cst_40 : f32 to vector<8x8xf32>
    %106 = arith.select %103, %104, %105 : vector<8x8xi1>, vector<8x8xf32>
    %cst_41 = arith.constant dense<0.000000e+00> : vector<8xf32>
    %107 = vector.multi_reduction <add>, %106, %cst_41 [1] : vector<8x8xf32> to vector<8xf32>
    %108 = vector.shape_cast %107 : vector<8xf32> to vector<8x1xf32>
    %cst_42 = arith.constant 1.000000e+00 : f32
    %109 = vector.broadcast %cst_42 : f32 to vector<8x1xf32>
    %110 = arith.maximumf %108, %109 : vector<8x1xf32>
    %cst_43 = arith.constant dense<0.000000e+00> : vector<8xf32>
    %111 = vector.multi_reduction <add>, %106, %cst_43 [0] : vector<8x8xf32> to vector<8xf32>
    %112 = vector.shape_cast %111 : vector<8xf32> to vector<1x8xf32>
    %cst_44 = arith.constant 1.000000e+00 : f32
    %113 = vector.broadcast %cst_44 : f32 to vector<1x8xf32>
    %114 = arith.maximumf %112, %113 : vector<1x8xf32>
    %115 = math.rsqrt %110 : vector<8x1xf32>
    %116 = vector.broadcast %115 : vector<8x1xf32> to vector<8x8xf32>
    %117 = arith.mulf %116, %106 : vector<8x8xf32>
    %118 = math.rsqrt %114 : vector<1x8xf32>
    %119 = vector.broadcast %118 : vector<1x8xf32> to vector<8x8xf32>
    %120 = arith.mulf %117, %119 : vector<8x8xf32>
    %cst_45 = arith.constant dense<0.000000e+00> : vector<8x128xf32>
    %121 = tpu.matmul %120, %1, %cst_45 {dimension_numbers = #tpu.dot_dimension_numbers<[1], [0], [0], [1], [0, 0, 1, 1], [], []>} : vector<8x8xf32>, vector<8x128xf32>, vector<8x128xf32> -> vector<8x128xf32>
    %cst_46 = arith.constant dense<0.000000e+00> : vector<8x128xf32>
    %122 = tpu.matmul %121, %4, %cst_46 {dimension_numbers = #tpu.dot_dimension_numbers<[1], [0], [0], [1], [0, 0, 1, 1], [], []>} : vector<8x128xf32>, vector<128x128xf32>, vector<8x128xf32> -> vector<8x128xf32>
    %123 = vector.broadcast %14 : vector<1x128xf32> to vector<8x128xf32>
    %124 = arith.addf %122, %123 : vector<8x128xf32>
    %cst_47 = arith.constant 0.000000e+00 : f32
    %125 = vector.broadcast %cst_47 : f32 to vector<8x128xf32>
    %126 = arith.cmpf ogt, %124, %125 : vector<8x128xf32>
    %cst_48 = arith.constant 0.000000e+00 : f32
    %127 = vector.broadcast %cst_48 : f32 to vector<8x128xf32>
    %128 = arith.minimumf %124, %127 : vector<8x128xf32>
    %129 = math.exp %128 : vector<8x128xf32>
    %cst_49 = arith.constant 1.000000e+00 : f32
    %130 = vector.broadcast %cst_49 : f32 to vector<8x128xf32>
    %131 = arith.subf %129, %130 : vector<8x128xf32>
    %132 = arith.select %126, %124, %131 : vector<8x128xi1>, vector<8x128xf32>
    %cst_50 = arith.constant dense<0.000000e+00> : vector<8x128xf32>
    %133 = tpu.matmul %120, %132, %cst_50 {dimension_numbers = #tpu.dot_dimension_numbers<[1], [0], [0], [1], [0, 0, 1, 1], [], []>} : vector<8x8xf32>, vector<8x128xf32>, vector<8x128xf32> -> vector<8x128xf32>
    %cst_51 = arith.constant dense<0.000000e+00> : vector<8x128xf32>
    %134 = tpu.matmul %133, %5, %cst_51 {dimension_numbers = #tpu.dot_dimension_numbers<[1], [0], [0], [1], [0, 0, 1, 1], [], []>} : vector<8x128xf32>, vector<128x128xf32>, vector<8x128xf32> -> vector<8x128xf32>
    %135 = vector.broadcast %15 : vector<1x128xf32> to vector<8x128xf32>
    %136 = arith.addf %134, %135 : vector<8x128xf32>
    %cst_52 = arith.constant 0.000000e+00 : f32
    %137 = vector.broadcast %cst_52 : f32 to vector<8x128xf32>
    %138 = arith.cmpf ogt, %136, %137 : vector<8x128xf32>
    %cst_53 = arith.constant 0.000000e+00 : f32
    %139 = vector.broadcast %cst_53 : f32 to vector<8x128xf32>
    %140 = arith.minimumf %136, %139 : vector<8x128xf32>
    %141 = math.exp %140 : vector<8x128xf32>
    %cst_54 = arith.constant 1.000000e+00 : f32
    %142 = vector.broadcast %cst_54 : f32 to vector<8x128xf32>
    %143 = arith.subf %141, %142 : vector<8x128xf32>
    %144 = arith.select %138, %136, %143 : vector<8x128xi1>, vector<8x128xf32>
    %145 = arith.addf %144, %1 : vector<8x128xf32>
    %cst_55 = arith.constant dense<0.000000e+00> : vector<8x128xf32>
    %146 = tpu.matmul %145, %6, %cst_55 {dimension_numbers = #tpu.dot_dimension_numbers<[1], [0], [0], [1], [0, 0, 1, 1], [], []>} : vector<8x128xf32>, vector<128x128xf32>, vector<8x128xf32> -> vector<8x128xf32>
    %147 = vector.broadcast %16 : vector<1x128xf32> to vector<8x128xf32>
    %148 = arith.addf %146, %147 : vector<8x128xf32>
    %cst_56 = arith.constant 0.000000e+00 : f32
    %149 = vector.broadcast %cst_56 : f32 to vector<8x128xf32>
    %150 = arith.maximumf %148, %149 : vector<8x128xf32>
    %cst_57 = arith.constant dense<0.000000e+00> : vector<8x128xf32>
    %151 = tpu.matmul %150, %7, %cst_57 {dimension_numbers = #tpu.dot_dimension_numbers<[1], [0], [0], [1], [0, 0, 1, 1], [], []>} : vector<8x128xf32>, vector<128x128xf32>, vector<8x128xf32> -> vector<8x128xf32>
    %152 = vector.broadcast %17 : vector<1x128xf32> to vector<8x128xf32>
    %153 = arith.addf %151, %152 : vector<8x128xf32>
    %cst_58 = arith.constant 0.000000e+00 : f32
    %154 = vector.broadcast %cst_58 : f32 to vector<8x128xf32>
    %155 = arith.maximumf %153, %154 : vector<8x128xf32>
    %cst_59 = arith.constant dense<0.000000e+00> : vector<8x128xf32>
    %156 = tpu.matmul %155, %8, %cst_59 {dimension_numbers = #tpu.dot_dimension_numbers<[1], [0], [0], [1], [0, 0, 1, 1], [], []>} : vector<8x128xf32>, vector<128x128xf32>, vector<8x128xf32> -> vector<8x128xf32>
    %c0_60 = arith.constant 0 : index
    %c0_61 = arith.constant 0 : index
    %c0_62 = arith.constant 0 : index
    %157 = vector.load %arg4[%c0_60, %c0_61, %c0_62] : memref<1x8x128xf32, #tpu.memory_space<vmem>>, vector<1x8x128xf32>
    %158 = vector.shape_cast %157 : vector<1x8x128xf32> to vector<8x128xf32>
    %159 = vector.shape_cast %156 : vector<8x128xf32> to vector<1x8x128xf32>
    tpu.vector_store %arg4[%c0_60, %c0_61, %c0_62], %159 {strides = array<i32>} : memref<1x8x128xf32, #tpu.memory_space<vmem>>, vector<1x8x128xf32>,
    return
  }
  func.func @transform_0(%arg0: i32) -> (i32, i32, i32) {
    %c0_i32 = arith.constant 0 : i32
    %c0_i32_0 = arith.constant 0 : i32
    %c0_i32_1 = arith.constant 0 : i32
    return %arg0, %c0_i32, %c0_i32_0 : i32, i32, i32
  }
  func.func @transform_1(%arg0: i32) -> (i32, i32) {
    %c0_i32 = arith.constant 0 : i32
    %c0_i32_0 = arith.constant 0 : i32
    %c0_i32_1 = arith.constant 0 : i32
    return %c0_i32, %c0_i32_0 : i32, i32
  }
  func.func @transform_2(%arg0: i32) -> (i32, i32) {
    %c0_i32 = arith.constant 0 : i32
    %c0_i32_0 = arith.constant 0 : i32
    %c0_i32_1 = arith.constant 0 : i32
    return %c0_i32, %c0_i32_0 : i32, i32
  }
  func.func @transform_3(%arg0: i32) -> (i32, i32, i32) {
    %c0_i32 = arith.constant 0 : i32
    %c0_i32_0 = arith.constant 0 : i32
    %c0_i32_1 = arith.constant 0 : i32
    return %arg0, %c0_i32, %c0_i32_0 : i32, i32, i32
  }
}

</mosaic_0001>

<bundles_post_ra>
// kernel: graphnet_forward.1
= control target key start
LH: loop header
LB: loop body
LE: loop exit
PB: predicated region body
PF: predicated region fallthrough
CT: control target
= control target key end

     0   :  { %8 = vsyncpa [#allocation3], 0  ;;  %s2514_s0 = inlined_call_operand.hbm [shape: f32[4,8,128], index: 0, kind: input, shape index: {}]   ;;  %s2515_s1 = inlined_call_operand.hbm [shape: f32[896,128], index: 1, kind: input, shape index: {}]   ;;  %s2516_s2 = inlined_call_operand.hbm [shape: f32[8,128], index: 2, kind: input, shape index: {}]   ;;  %s2517_s3 = inlined_call_operand.hbm [shape: f32[4,8,128], index: 3, kind: output, shape index: {}]  }
   0x1   :  { %10 = vsyncpa [#allocation3 + $0x1], 0 }
   0x2   :  { %11 = vsyncpa [#allocation6], 0 }
   0x3   :  { %12 = vsyncpa [#allocation4], 0 }
   0x4   :  { %14 = vsyncpa [#allocation4 + $0x1], 0  ;;  %s2171_s12 = smov 0   ;;  %s2173_s13 = smov 0  }
   0x5   :  { %s2175_s14 = smov 0   ;;  %s2177_s15 = smov 0  }
   0x6 LB: > { %s2192_s16 = sadd.s32 4294967295, %s2139_s15   ;;  %s1324_s17 = sadd.s32 4294967294, %s2139_s15   ;;  %s2139_s15 = sphi %s2177_s15, %s2536_s15   ;;  %s2135_s14 = sphi %s2175_s14, %s2535_s14   ;;  %s2131_s13 = sphi %s2173_s13, %s2534_s13   ;;  %s2127_s12 = sphi %s2171_s12, %s2533_s12  }
   0x7   : > { %p40_p0 = scmp.ne.s32.totalorder %s2131_s13, %s2127_s12  ;;  %p2518_p1 = scmp.eq.s32.totalorder %s2192_s16, 0 }
   0x8   : > { %p112_p3 = scmp.eq.s32.totalorder %s1324_s17, 3  ;;  %p1325_p5 = scmp.ge.s32.totalorder %s2139_s15, 1 }
   0x9   : > { %p2201_p4 = por %p2518_p1, %p40_p0  ;;  %p119_p7 = scmp.lt.s32.totalorder %s2139_s15, 5 }
   0xa   : > { %p2206_p6 = por %p112_p3, %p40_p0  ;;  %s2141_s21 = smov [#allocation5]  }
   0xb   : > { %s2521_s18 = scalar_select %p2201_p4, 1, 0 }
   0xc   : > { %s2522_s19 = scalar_select %p2206_p6, 1, 0 }
   0xd   : > { %p2211_p8 = pnand %p1325_p5, %p119_p7  ;;  %s131_s22 = sshll.u32 %s2141_s21, 4  ;;  %s132_s22 = int_to_ptr.vmem [resolvable:$true] %s131_s22 }
   0xe   : > { %s2142_s24 = smov [#allocation7]   ;;  %s1983_s28 = scalar_lea.hbm %s2515_s1, 14336 }
   0xf   : > { %s2523_s20 = scalar_select %p2211_p8, 1, 0 }
  0x10   : > { %p1909_p9 = pneg %p2211_p8  ;;  %s145_s25 = sshll.u32 %s2142_s24, 4  ;;  %s2223_s25 = int_to_ptr.vmem [resolvable:$true] %s145_s25 }
  0x11   : > { %p1984_p11 = scmp.ne.s32.totalorder %s2515_s1, %s1983_s28  ;;  %p1990_p3 = scmp.lt.u32.totalorder %s1983_s28, %s2515_s1 }
  0x12   : > { %p2219_p10 = pnand %p1909_p9, %p2518_p1 }
  0x14   : > { %p1985_p12 = pneg %p2219_p10 }
  0x16   : > { %p1986_p13 = pnand %p1985_p12, %p1984_p11 }
  0x18   : > { %p1987_p0 = pneg %p1986_p13 }
  0x1a   : > { %p1992_p5 = pnand %p1990_p3, %p1987_p0 }
  0x1c   : > { %1995 = shalt.err (!%p1992_p5)
}
  0x1d   : > { %s1996_s6 = scalar_lea.vmem %s132_s22, 14336  ;;  %p2004_p2 = scmp.lt.s32.totalorder %s132_s22, %s132_s22 }
  0x1e   : > { %p1997_p7 = scmp.ne.s32.totalorder %s132_s22, %s1996_s6  ;;  %p2005_p6 = scmp.lt.s32.totalorder %s1996_s6, %s1996_s6 }
  0x20   : > { %p1999_p9 = pnand %p1997_p7, %p1985_p12  ;;  %p2006_p4 = por %p2005_p6, %p2004_p2 }
  0x22   : > { %p2000_p1 = pneg %p1999_p9 }
  0x24   : > { %p2007_p8 = pnand %p2006_p4, %p2000_p1 }
  0x26   : > { %2010 = shalt.err (!%p2007_p8)
}
  0x27   : > { %s2143_s7 = smov 128   ;;  %s2144_s8 = smov 8  }
  0x28   : > { %1912 = dma.hbm_to_vmem [thread:$0]  (!%p2219_p10), %s2515_s1, 14336, %s132_s22, [#allocation6], %s2143_s7, %s2143_s7, %s2144_s8  }
  0x29   : > { %s2011_s21 = scalar_lea.hbm %s2516_s2, 128 }
  0x2a   : > { %p2012_p11 = scmp.ne.s32.totalorder %s2516_s2, %s2011_s21  ;;  %p2018_p4 = scmp.lt.u32.totalorder %s2011_s21, %s2516_s2 }
  0x2c   : > { %p2014_p1 = pnand %p2012_p11, %p1985_p12 }
  0x2e   : > { %p2015_p2 = pneg %p2014_p1 }
  0x30   : > { %p2020_p6 = pnand %p2018_p4, %p2015_p2 }
  0x32   : > { %2023 = shalt.err (!%p2020_p6)
}
  0x33   : > { %s2024_s22 = scalar_lea.vmem %s2223_s25, 128  ;;  %p2032_p3 = scmp.lt.s32.totalorder %s2223_s25, %s2223_s25 }
  0x34   : > { %p2025_p8 = scmp.ne.s32.totalorder %s2223_s25, %s2024_s22  ;;  %p2033_p5 = scmp.lt.s32.totalorder %s2024_s22, %s2024_s22 }
  0x36   : > { %p2027_p13 = pnand %p2025_p8, %p1985_p12  ;;  %p2034_p7 = por %p2033_p5, %p2032_p3 }
  0x38   : > { %p2028_p0 = pneg %p2027_p13 }
  0x3a   : > { %p2035_p9 = pnand %p2034_p7, %p2028_p0 }
  0x3c   : > { %2038 = shalt.err (!%p2035_p9)
}
  0x3d   : > { %1915 = dma.hbm_to_vmem [thread:$0]  (!%p2219_p10), %s2516_s2, 128, %s2223_s25, [#allocation6]  }
  0x3e   : > { %s2273_s4 = sadd.s32 1, %s2139_s15   ;;  %s27_s23 = sadd.s32 1, %s2135_s14 }
  0x3f   : > { %s24_s5 = ssub.s32 %s2139_s15, %s2273_s4  ;;  %p34_p12 = scmp.ne.s32.totalorder %s2135_s14, %s2131_s13 }
  0x40   : > { %p25_p11 = scmp.eq.s32.totalorder %s24_s5, 0  ;;  %p35_p1 = scmp.eq.s32.totalorder %s2139_s15, 0 }
  0x41   : > { %p2525_p2 = scmp.eq.s32.totalorder %s2192_s16, 3  ;;  %p1926_p6 = scmp.lt.s32.totalorder %s2139_s15, 4 }
  0x42   : > { %s2289_s7 = scalar_select %p25_p11, %s2135_s14, %s27_s23  }
  0x43   : > { %p2283_p4 = por %p2525_p2, %p34_p12  ;;  %p36_p8 = por %p35_p1, %p34_p12 }
  0x44   : > { %s156_s8 = sand.u32 1, %s2135_s14   ;;  %s1330_s25 = sshll.u32 %s2139_s15, 7 }
  0x45   : > { %s1329_s9 = sshll.u32 %s156_s8, 3  ;;  %s2296_s17 = scalar_lea.hbm %s2514_s0, %s1330_s25 }
  0x46   : > { %s160_s21 = scalar_lea.vmem [#allocation2], %s1329_s9  ;;  %p2300_p10 = pnand %p1926_p6, %p36_p8 }
  0x47   : > { %s167_s24 = sshll.u32 %s160_s21, 4  ;;  %s157_s27 = scalar_lea.sflag [#allocation3], %s156_s8  ;;  %s2298_s24 = int_to_ptr.vmem [resolvable:$true] %s167_s24 }
  0x48   : > { %s2039_s28 = scalar_lea.hbm %s2296_s17, 128  ;;  %p2041_p0 = pneg %p2300_p10 }
  0x49   : > { %p2040_p13 = scmp.ne.s32.totalorder %s2296_s17, %s2039_s28  ;;  %s2044_s30 = scalar_lea.hbm %s2514_s0, 512 }
  0x4a   : > { %p2045_p7 = scmp.lt.u32.totalorder %s2296_s17, %s2514_s0  ;;  %p2046_p9 = scmp.lt.u32.totalorder %s2044_s30, %s2039_s28 }
  0x4b   : > { %p2042_p3 = pnand %p2041_p0, %p2040_p13  ;;  %p2048_p11 = scmp.lt.u32.totalorder %s2039_s28, %s2296_s17 }
  0x4c   : > { %p2047_p12 = por %p2046_p9, %p2045_p7 }
  0x4d   : > { %p2043_p5 = pneg %p2042_p3 }
  0x4e   : > { %p2049_p1 = por %p2048_p11, %p2047_p12 }
  0x50   : > { %p2050_p2 = pnand %p2049_p1, %p2043_p5 }
  0x52   : > { %2053 = shalt.err (!%p2050_p2)
}
  0x53   : > { %s2054_s8 = scalar_lea.vmem %s2298_s24, 128  ;;  %s2145_s9 = smov [#allocation2]  }
  0x54   : > { %p2055_p6 = scmp.ne.s32.totalorder %s2298_s24, %s2054_s8  ;;  %s2059_s25 = sshll.u32 %s2145_s9, 4  ;;  %s2060_s25 = int_to_ptr.vmem [resolvable:$false] %s2059_s25 }
  0x55   : > { %s2061_s10 = scalar_lea.vmem %s2060_s25, 256  ;;  %p2062_p3 = scmp.lt.s32.totalorder %s2298_s24, %s2060_s25 }
  0x56   : > { %p2057_p8 = pnand %p2055_p6, %p2041_p0  ;;  %p2063_p7 = scmp.lt.s32.totalorder %s2061_s10, %s2054_s8 }
  0x58   : > { %p2058_p13 = pneg %p2057_p8  ;;  %p2064_p9 = por %p2063_p7, %p2062_p3 }
  0x5a   : > { %p2065_p12 = pnand %p2064_p9, %p2058_p13 }
  0x5c   : > { %2068 = shalt.err (!%p2065_p12)
}
  0x5d   : > { %1919 = dma.hbm_to_vmem [thread:$0]  (!%p2300_p10), %s2296_s17, 128, %s2298_s24, %s157_s27  }
  0x5e   : > { %p2528_p5 = scmp.ne.s32.totalorder %s2523_s20, 0 }
  0x5f   : > { %s2332_s11 = sand.u32 (!%p2528_p5), 1, %s2131_s13   ;;  %p2529_p0 = scmp.ne.s32.totalorder (!%p2528_p5), %s2521_s18, 0 }
  0x60   : > { %176 = sbr.rel (%p2528_p5) target bundleno = 3870 (0xf1e), region = 32  ;;  %s1332_s21 = sshll.u32 (!%p2528_p5), %s2332_s11, 3 }
  0x61   : > { %s179_s28 = scalar_lea.sflag (!%p2528_p5), [#allocation3], %s2332_s11  ;;  %s2338_s22 = scalar_lea.vmem (!%p2528_p5), [#allocation2], %s1332_s21 }
  0x67   : > { %2114 = dma.done.wait (%p2529_p0), %s179_s28, 128  }
  0x68   : > { %2116 = vsyncadd (%p2529_p0), %s179_s28, 4294967168  ;;  %p2530_p10 = scmp.eq.s32.totalorder %s2192_s16, 0 }
  0x6a   : > { %2118 = dma.done.wait (%p2530_p10), [#allocation6], 14464   ;;  %p2531_p11 = pmov %p2530_p10 }
  0x6b   : > { %v2146_v0 = vmov 0.0|0.0   ;;  %vm2147_vm0 = vmmov 0   ;;  %v2148_v1 = vmov 0.0   ;;  %v214_v2 = vld [vmem:[#allocation5] sm:$0xff]  ;;  %v215_v3 = vld [vmem:[#allocation5 + $0x8] sm:$0xff]  ;;  %v216_v4 = vld [vmem:[#allocation5 + $0x10] sm:$0xff]  ;;  %v327_v51 = vlaneseq }
  0x6c   : > { %2120 = vsyncadd (%p2531_p11), [#allocation6], 4294952832  ;;  %1729 = vmatprep.subr.bf16.mxu0 %v2146_v0  ;;  %1501 = vmatprep.mubr.msk.f32.mxu0 %vm2147_vm0, %v2148_v1  ;;  %v1730_v5 = vpack.c.bf16 %v215_v3, %v214_v2  ;;  %v217_v6 = vld [vmem:[#allocation5 + $0x18] sm:$0xff]  ;;  %v218_v8 = vld [vmem:[#allocation5 + $0x20] sm:$0xff]  ;;  %vm613_vm1 = vcmask 64512   ;;  %s212_s18 = scalar_lea.vmem [#allocation8], %s1332_s21 }
  0x6d   : > { %1753 = vmatprep.subr.bf16.mxu1 %v2146_v0  ;;  %1536 = vmatprep.mubr.msk.f32.mxu1 %vm2147_vm0, %v2148_v1  ;;  %v1733_v7 = vpack.c.bf16 %v217_v6, %v216_v4  ;;  %v219_v9 = vld [vmem:[#allocation5 + $0x28] sm:$0xff]  ;;  %v230_v10 = vld [vmem:[#allocation5 + $0x80] sm:$0xff]  ;;  %v232_v12 = vld [vmem:[#allocation5 + $0x90] sm:$0xff]  ;;  %v2376_v52 = vshrl.u32 %v327_v51, 7  ;;  %s1235_s20 = sshll.u32 %s212_s18, 4  ;;  %s1341_s17 = sshll.u32 %s2192_s16, 7  ;;  %s2468_s20 = int_to_ptr.vmem [resolvable:$true] %s1235_s20 }
  0x6e   : > { %1731 = vmatpush3.bf16.msra.mxu0 %v1730_v5  ;;  %v231_v11 = vld [vmem:[#allocation5 + $0x88] sm:$0xff]  ;;  %v233_v13 = vld [vmem:[#allocation5 + $0x98] sm:$0xff]  ;;  %v1736_v14 = vpack.c.bf16 %v219_v9, %v218_v8  ;;  %v220_v16 = vld [vmem:[#allocation5 + $0x30] sm:$0xff]  ;;  %s2473_s27 = scalar_lea.hbm %s2517_s3, %s1341_s17  ;;  %s1222_s29 = scalar_lea.sflag [#allocation4], %s2332_s11 }
  0x6f   : > { %1732 = vmatprep.subr.bf16.mxu0 %v2146_v0  ;;  %v1754_v15 = vpack.c.bf16 %v231_v11, %v230_v10  ;;  %v221_v17 = vld [vmem:[#allocation5 + $0x38] sm:$0xff]  ;;  %v1757_v18 = vpack.c.bf16 %v233_v13, %v232_v12  ;;  %v234_v19 = vld [vmem:[#allocation5 + $0xa0] sm:$0xff]  ;;  %v235_v20 = vld [vmem:[#allocation5 + $0xa8] sm:$0xff]  ;;  %v329_v53 = vsub.s32 0, %v2376_v52  ;;  %v404_v60 = vsub.s32 1, %v2376_v52  ;;  %s2069_s30 = scalar_lea.vmem %s2468_s20, 128 }
  0x70   : > { %v1739_v21 = vpack.c.bf16 %v221_v17, %v220_v16  ;;  %v222_v22 = vld [vmem:[#allocation5 + $0x40] sm:$0xff]  ;;  %v223_v23 = vld [vmem:[#allocation5 + $0x48] sm:$0xff]  ;;  %v1760_v24 = vpack.c.bf16 %v235_v20, %v234_v19  ;;  %v236_v25 = vld [vmem:[#allocation5 + $0xb0] sm:$0xff]  ;;  %v479_v62 = vsub.s32 2, %v2376_v52  ;;  %v486_v8 = vsub.s32 3, %v2376_v52  ;;  %p2070_p1 = scmp.ne.s32.totalorder %s2468_s20, %s2069_s30  ;;  %s2150_s16 = smov [#allocation8]  }
  0x71   : > { %1755 = vmatpush3.bf16.msra.mxu1 %v1754_v15  ;;  %v237_v26 = vld [vmem:[#allocation5 + $0xb8] sm:$0xff]  ;;  %v1742_v27 = vpack.c.bf16 %v223_v23, %v222_v22  ;;  %v224_v28 = vld [vmem:[#allocation5 + $0x50] sm:$0xff]  ;;  %v238_v31 = vld [vmem:[#allocation5 + $0xc0] sm:$0xff]  ;;  %s2073_s23 = sshll.u32 %s2150_s16, 4  ;;  %s2074_s23 = int_to_ptr.vmem [resolvable:$false] %s2073_s23 }
  0x72   : > { %1734 = vmatpush3.bf16.msra.mxu0 %v1733_v7  ;;  %1756 = vmatprep.subr.bf16.mxu1 %v2146_v0  ;;  %v225_v29 = vld [vmem:[#allocation5 + $0x58] sm:$0xff]  ;;  %v1763_v30 = vpack.c.bf16 %v237_v26, %v236_v25  ;;  %v239_v32 = vld [vmem:[#allocation5 + $0xc8] sm:$0xff]  ;;  %v226_v34 = vld [vmem:[#allocation5 + $0x60] sm:$0xff]  ;;  %v2149_v7 = vmov 0   ;;  %p2071_p2 = pnand %p2070_p1, %p2283_p4  ;;  %s2075_s5 = scalar_lea.vmem %s2074_s23, 256 }
  0x73   : > { %1735 = vmatprep.subr.bf16.mxu0 %v2146_v0  ;;  %v1745_v33 = vpack.c.bf16 %v225_v29, %v224_v28  ;;  %v227_v35 = vld [vmem:[#allocation5 + $0x68] sm:$0xff]  ;;  %v1766_v36 = vpack.c.bf16 %v239_v32, %v238_v31  ;;  %v240_v37 = vld [vmem:[#allocation5 + $0xd0] sm:$0xff]  ;;  %v241_v38 = vld [vmem:[#allocation5 + $0xd8] sm:$0xff]  ;;  %1970 = vset.pattern.permute.xlu0 %v2149_v7  ;;  %p2076_p8 = scmp.lt.s32.totalorder %s2468_s20, %s2074_s23  ;;  %p2077_p13 = scmp.lt.s32.totalorder %s2075_s5, %s2069_s30 }
  0x74   : > { %v1748_v39 = vpack.c.bf16 %v227_v35, %v226_v34  ;;  %v228_v40 = vld [vmem:[#allocation5 + $0x70] sm:$0xff]  ;;  %v229_v41 = vld [vmem:[#allocation5 + $0x78] sm:$0xff]  ;;  %v1769_v42 = vpack.c.bf16 %v241_v38, %v240_v37  ;;  %v242_v43 = vld [vmem:[#allocation5 + $0xe0] sm:$0xff]  ;;  %p2072_p6 = pneg %p2071_p2 }
  0x75   : > { %1758 = vmatpush3.bf16.msra.mxu1 %v1757_v18  ;;  %v243_v44 = vld [vmem:[#allocation5 + $0xe8] sm:$0xff]  ;;  %v1751_v45 = vpack.c.bf16 %v229_v41, %v228_v40  ;;  %v2368_v47 = vld [vmem:[%s2338_s22] sm:$0xff]  ;;  %v2379_v54 = vld [vmem:[#allocation7] sm:$0xff]  ;;  %p2078_p3 = por %p2077_p13, %p2076_p8 }
  0x76   : > { %1737 = vmatpush3.bf16.msra.mxu0 %v1736_v14  ;;  %1759 = vmatprep.subr.bf16.mxu1 %v2146_v0  ;;  %v1772_v46 = vpack.c.bf16 %v243_v44, %v242_v43  ;;  %v244_v48 = vld [vmem:[#allocation5 + $0xf0] sm:$0xff]  ;;  %v245_v49 = vld [vmem:[#allocation5 + $0xf8] sm:$0xff]  ;;  %v330_v55 = vrot.slane %v2379_v54, %v329_v53  ;;  %v405_v61 = vrot.slane %v2379_v54, %v404_v60 }
  0x77   : > { %1738 = vmatprep.subr.bf16.mxu0 %v2146_v0  ;;  %v1775_v50 = vpack.c.bf16 %v245_v49, %v244_v48  ;;  %v480_v4 = vrot.slane %v2379_v54, %v479_v62  ;;  %v487_v9 = vrot.slane %v2379_v54, %v486_v8  ;;  %v248_v60 = vld [vmem:[#allocation5 + $0x110] sm:$0xff]  ;;  %v249_v62 = vld [vmem:[#allocation5 + $0x118] sm:$0xff]  ;;  %v254_v8 = vld [vmem:[#allocation5 + $0x140] sm:$0xff]  ;;  %p2079_p7 = pnand %p2078_p3, %p2072_p6 }
  0x79   : > { %1761 = vmatpush3.bf16.msra.mxu1 %v1760_v24 }
  0x7a   : > { %1740 = vmatpush3.bf16.msra.mxu0 %v1739_v21  ;;  %1762 = vmatprep.subr.bf16.mxu1 %v2146_v0 }
  0x7b   : > { %1741 = vmatprep.subr.bf16.mxu0 %v2146_v0 }
  0x7d   : > { %1764 = vmatpush3.bf16.msra.mxu1 %v1763_v30  ;;  %v611_v30 = vand.u32 127, %v327_v51 }
  0x7e   : > { %1743 = vmatpush3.bf16.msra.mxu0 %v1742_v27  ;;  %1765 = vmatprep.subr.bf16.mxu1 %v2146_v0 }
  0x7f   : > { %1744 = vmatprep.subr.bf16.mxu0 %v2146_v0  ;;  %v612_v31 = vcvt.s32.f32 %v611_v30 }
  0x81   : > { %1767 = vmatpush3.bf16.msra.mxu1 %v1766_v36 }
  0x82   : > { %1746 = vmatpush3.bf16.msra.mxu0 %v1745_v33  ;;  %1768 = vmatprep.subr.bf16.mxu1 %v2146_v0 }
  0x83   : > { %1747 = vmatprep.subr.bf16.mxu0 %v2146_v0 }
  0x85   : > { %1770 = vmatpush3.bf16.msra.mxu1 %v1769_v42 }
  0x86   : > { %1749 = vmatpush3.bf16.msra.mxu0 %v1748_v39  ;;  %1771 = vmatprep.subr.bf16.mxu1 %v2146_v0 }
  0x87   : > { %1750 = vmatprep.subr.bf16.mxu0 %v2146_v0 }
  0x89   : > { %1773 = vmatpush3.bf16.msra.mxu1 %v1772_v46 }
  0x8a   : > { %1752 = vmatpush3.bf16.msra.mxu0 %v1751_v45  ;;  %1774 = vmatprep.subr.bf16.mxu1 %v2146_v0 }
  0x8b   : > { %1777 = vmatprep.subr.bf16.mxu0 %v2146_v0 }
  0x8d   : > { %1502 = vmatmul.mubr.f32.vlgmr.msra.gmra.mrb[0].mxu0 %v2368_v47  ;;  %1776 = vmatpush3.bf16.msra.mxu1 %v1775_v50 }
  0x8e   : > { %1581 = vmatprep.mubr.msk.f32.mxu0 %vm2147_vm0, %v2148_v1  ;;  %1539 = vmatprep.subr.mxu1 %v2148_v1 }
 0x160   : > { %v397_v56 = vpop.f32.mrb[0].mxu0 }
 0x161   : > { %v398_v57 = vadd.f32 %v397_v56, %v330_v55  ;;  %v1503_v58 = vpop.f32.mrb[1].mxu0 }
 0x162   : > { %v246_v58 = vld [vmem:[#allocation5 + $0x100] sm:$0xff] }
 0x163   : > { %v401_v59 = vmax.f32 %v398_v57, 0.0 }
 0x165   : > { %1537 = vmatmul.mubr.f32.vlgmr.msra.gmra.mrb[0].mxu1 %v401_v59  ;;  %v247_v59 = vld [vmem:[#allocation5 + $0x108] sm:$0xff] }
 0x166   : > { %1541 = vmatprep.mubr.msk.f32.mxu1 %vm2147_vm0, %v2148_v1 }
 0x238   : > { %v472_v63 = vpop.f32.mrb[0].mxu1 }
 0x239   : > { %v473_v2 = vadd.f32 %v472_v63, %v405_v61  ;;  %v1538_v3 = vpop.f32.mrb[1].mxu1  ;;  %v1778_v61 = vpack.c.bf16 %v247_v59, %v246_v58  ;;  %v1781_v63 = vpack.c.bf16 %v249_v62, %v248_v60  ;;  %v269_v58 = vld [vmem:[#allocation5 + $0x1b8] sm:$0xff]  ;;  %v270_v60 = vld [vmem:[#allocation5 + $0x1c0] sm:$0xff] }
 0x23a   : > { %v251_v3 = vld [vmem:[#allocation5 + $0x128] sm:$0xff] }
 0x23b   : > { %v476_v5 = vmax.f32 %v473_v2, 0.0  ;;  %1779 = vmatpush3.bf16.msra.mxu0 %v1778_v61  ;;  %v250_v2 = vld [vmem:[#allocation5 + $0x120] sm:$0xff]  ;;  %v271_v61 = vld [vmem:[#allocation5 + $0x1c8] sm:$0xff] }
 0x23c   : > { %1780 = vmatprep.subr.bf16.mxu0 %v2146_v0  ;;  %v1814_v62 = vpack.c.bf16 %v271_v61, %v270_v60  ;;  %v921_v60 = vsub.s32 5, %v2376_v52 }
 0x23d   : > { %v481_v6 = vmul.f32 %v480_v4, %v476_v5  ;;  %v1784_v4 = vpack.c.bf16 %v251_v3, %v250_v2  ;;  %v252_v5 = vld [vmem:[#allocation5 + $0x130] sm:$0xff]  ;;  %v273_v2 = vld [vmem:[#allocation5 + $0x1d8] sm:$0xff] }
 0x23e   : > { %v922_v61 = vrot.slane %v2379_v54, %v921_v60 }
 0x23f   : > { %482 = vadd.xlane.f32.xlu0 %v481_v6  ;;  %1782 = vmatpush3.bf16.msra.mxu0 %v1781_v63  ;;  %v253_v6 = vld [vmem:[#allocation5 + $0x138] sm:$0xff]  ;;  %v272_v63 = vld [vmem:[#allocation5 + $0x1d0] sm:$0xff] }
 0x240   : > { %1783 = vmatprep.subr.bf16.mxu0 %v2146_v0  ;;  %v1787_v7 = vpack.c.bf16 %v253_v6, %v252_v5  ;;  %v1817_v3 = vpack.c.bf16 %v273_v2, %v272_v63  ;;  %v275_v5 = vld [vmem:[#allocation5 + $0x1e8] sm:$0xff] }
 0x243   : > { %1785 = vmatpush3.bf16.msra.mxu0 %v1784_v4  ;;  %v274_v4 = vld [vmem:[#allocation5 + $0x1e0] sm:$0xff] }
 0x244   : > { %1786 = vmatprep.subr.bf16.mxu0 %v2146_v0  ;;  %v1820_v6 = vpack.c.bf16 %v275_v5, %v274_v4 }
 0x247   : > { %1788 = vmatpush3.bf16.msra.mxu0 %v1787_v7  ;;  %v276_v7 = vld [vmem:[#allocation5 + $0x1f0] sm:$0xff] }
 0x248   : > { %1789 = vmatprep.subr.bf16.mxu0 %v2146_v0 }
 0x2cc   : > { %v483_v10 = vpop.xlane.xlu0 %482 }
 0x2cd   : > { %v488_v11 = vadd.f32 %v487_v9, %v483_v10  ;;  %v255_v9 = vld [vmem:[#allocation5 + $0x148] sm:$0xff] }
 0x2ce   : > { %v1790_v10 = vpack.c.bf16 %v255_v9, %v254_v8  ;;  %v277_v8 = vld [vmem:[#allocation5 + $0x1f8] sm:$0xff] }
 0x2cf   : > { %v489_v12 = vadd.f32 2.220446e-16, %v488_v11  ;;  %v256_v11 = vld [vmem:[#allocation5 + $0x150] sm:$0xff]  ;;  %v1823_v9 = vpack.c.bf16 %v277_v8, %v276_v7 }
 0x2d0   : > { %1791 = vmatpush3.bf16.msra.mxu0 %v1790_v10  ;;  %v278_v10 = vld [vmem:[#allocation5 + $0x200] sm:$0xff] }
 0x2d1   : > { %492 = vperm.xlu0 %1970, %v489_v12   ;;  %v257_v12 = vld [vmem:[#allocation5 + $0x158] sm:$0xff]  ;;  %1792 = vmatprep.subr.bf16.mxu0 %v2146_v0 }
 0x350   : > { %v493_v13 = vpop.permute.xlu0 %492 }
 0x351   : > { %1971 = vrcp.f32 %v493_v13  ;;  %v1793_v13 = vpack.c.bf16 %v257_v12, %v256_v11  ;;  %v279_v11 = vld [vmem:[#allocation5 + $0x208] sm:$0xff]  ;;  %v280_v12 = vld [vmem:[#allocation5 + $0x210] sm:$0xff] }
 0x353   : > { %1794 = vmatpush3.bf16.msra.mxu0 %v1793_v13  ;;  %v1826_v13 = vpack.c.bf16 %v279_v11, %v278_v10  ;;  %v309_v10 = vld [vmem:[#allocation5 + $0x2f8] sm:$0xff] }
 0x354   : > { %1795 = vmatprep.subr.bf16.mxu0 %v2146_v0 }
 0x35b   : > { %v1972_v14 = vpop.eup %1971 }
 0x35c   : > { %v496_v15 = vmul.f32 %v1972_v14, %v2368_v47  ;;  %v258_v14 = vld [vmem:[#allocation5 + $0x160] sm:$0xff] }
 0x35e   : > { %1540 = vmatpush3.xpose.msra.mxu1 %v496_v15  ;;  %v567_v16 = vmul.f32 %v496_v15, %v496_v15 }
 0x35f   : > { %1544 = vmatprep.subr.mxu1 %v2148_v1 }
 0x360   : > { %568 = vadd.xlane.f32.xlu1 %v567_v16 }
 0x361   : > { %1542 = vmatmul.mubr.f32.vlgmr.msra.gmra.mrb[2].mxu1 %v496_v15  ;;  %v259_v15 = vld [vmem:[#allocation5 + $0x168] sm:$0xff] }
 0x362   : > { %1545 = vmatpush3.msra.mxu1 %v2368_v47  ;;  %1546 = vmatprep.mubr.msk.f32.mxu1 %vm2147_vm0, %v2148_v1  ;;  %v1796_v16 = vpack.c.bf16 %v259_v15, %v258_v14  ;;  %v281_v14 = vld [vmem:[#allocation5 + $0x218] sm:$0xff] }
 0x363   : > { %1584 = vmatprep.subr.mxu1 %v2148_v1  ;;  %v1829_v15 = vpack.c.bf16 %v281_v14, %v280_v12  ;;  %v310_v12 = vld [vmem:[#allocation5 + $0x300] sm:$0xff]  ;;  %v312_v14 = vld [vmem:[#allocation5 + $0x310] sm:$0xff] }
 0x364   : > { %1797 = vmatpush3.bf16.msra.mxu0 %v1796_v16 }
 0x365   : > { %1798 = vmatprep.subr.bf16.mxu0 %v2146_v0 }
 0x3ed   : > { %v569_v17 = vpop.xlane.xlu1 %568 }
 0x3ee   : > { %570 = vxpose.xlu1.b32.start.end [1/1] (short) (narrow) %v569_v17, 8 }
 0x434   : > { %v563_v18 = vpop.f32.mrb[2].mxu1 }
 0x435   : > { %v1543_v19 = vpop.f32.mrb[3].mxu1  ;;  %v603_v21 = vmul.f32 2.0, %v563_v18  ;;  %v261_v18 = vld [vmem:[#allocation5 + $0x178] sm:$0xff] }
 0x46e   : > { %v586_v20 = vpop.trf.xlu1 }
 0x46f   : > { %v602_v22 = vadd.f32 %v586_v20, %v569_v17  ;;  %v260_v17 = vld [vmem:[#allocation5 + $0x170] sm:$0xff] }
 0x470   : > { %v1799_v19 = vpack.c.bf16 %v261_v18, %v260_v17  ;;  %v282_v18 = vld [vmem:[#allocation5 + $0x220] sm:$0xff] }
 0x471   : > { %v604_v23 = vsub.f32 %v602_v22, %v603_v21 }
 0x472   : > { %1800 = vmatpush3.bf16.msra.mxu0 %v1799_v19  ;;  %v283_v19 = vld [vmem:[#allocation5 + $0x228] sm:$0xff] }
 0x473   : > { %v605_v24 = vmax.f32 %v604_v23, 0.0  ;;  %1825 = vmatprep.subr.bf16.mxu0 %v2146_v0 }
 0x475   : > { %v606_v25 = vmul.f32 0.0078125, %v605_v24 }
 0x477   : > { %v607_v26 = vmul.f32 -0.5, %v606_v25 }
 0x479   : > { %v608_v27 = vmul.f32 1.442695, %v607_v26 }
 0x47b   : > { %1973 = vpow2.f32 %v608_v27 }
 0x485   : > { %v1974_v28 = vpop.eup %1973 }
 0x486   : > { %v614_v29 = vsel %vm613_vm1, %v1974_v28, -inf }
 0x487   : > { %615 = vmax.xlane.f32.xlu0 %v614_v29 }
 0x514   : > { %v616_v32 = vpop.xlane.xlu0 %615 }
 0x515   : > { %vm617_vm2 = vcmp.eq.f32.partialorder %v1974_v28, %v616_v32 }
 0x516   : > { %v618_v33 = vsel %vm617_vm2, %v612_v31, 8.0 }
 0x517   : > { %v619_v34 = vsel %vm613_vm1, %v618_v33, inf }
 0x518   : > { %620 = vmin.xlane.f32.xlu1 %v619_v34 }
 0x5a5   : > { %v621_v35 = vpop.xlane.xlu1 %620 }
 0x5a6   : > { %vm622_vm3 = vcmp.eq.f32.partialorder %v612_v31, %v621_v35  ;;  %v771_v35 = vsub.s32 4, %v2376_v52 }
 0x5a7   : > { %v624_v36 = vsel %vm622_vm3, -inf, %v1974_v28  ;;  %v623_v42 = vsel %vm622_vm3, 1.0, %v2148_v1 }
 0x5a8   : > { %v625_v37 = vsel %vm613_vm1, %v624_v36, -inf }
 0x5a9   : > { %626 = vmax.xlane.f32.xlu0 %v625_v37 }
 0x636   : > { %v627_v38 = vpop.xlane.xlu0 %626 }
 0x637   : > { %vm628_vm4 = vcmp.eq.f32.partialorder %v624_v36, %v627_v38 }
 0x638   : > { %v629_v39 = vsel %vm628_vm4, %v612_v31, 8.0 }
 0x639   : > { %v630_v40 = vsel %vm613_vm1, %v629_v39, inf }
 0x63a   : > { %631 = vmin.xlane.f32.xlu0 %v630_v40 }
 0x6c7   : > { %v632_v41 = vpop.xlane.xlu0 %631 }
 0x6c8   : > { %vm633_vm5 = vcmp.eq.f32.partialorder %v612_v31, %v632_v41 }
 0x6c9   : > { %v634_v43 = vsel %vm633_vm5, 1.0, %v623_v42  ;;  %v635_v44 = vsel %vm633_vm5, -inf, %v624_v36  ;;  %v772_v36 = vrot.slane %v2379_v54, %v771_v35  ;;  %v262_v42 = vld [vmem:[#allocation5 + $0x180] sm:$0xff] }
 0x6ca   : > { %v636_v45 = vsel %vm613_vm1, %v635_v44, -inf }
 0x6cb   : > { %637 = vmax.xlane.f32.xlu0 %v636_v45 }
 0x758   : > { %v638_v46 = vpop.xlane.xlu0 %637 }
 0x759   : > { %vm639_vm6 = vcmp.eq.f32.partialorder %v635_v44, %v638_v46 }
 0x75a   : > { %v640_v48 = vsel %vm639_vm6, %v612_v31, 8.0 }
 0x75b   : > { %v641_v49 = vsel %vm613_vm1, %v640_v48, inf }
 0x75c   : > { %642 = vmin.xlane.f32.xlu0 %v641_v49  ;;  %v264_v49 = vld [vmem:[#allocation5 + $0x190] sm:$0xff] }
 0x7e9   : > { %v643_v50 = vpop.xlane.xlu0 %642 }
 0x7ea   : > { %vm644_vm7 = vcmp.eq.f32.partialorder %v612_v31, %v643_v50  ;;  %v265_v50 = vld [vmem:[#allocation5 + $0x198] sm:$0xff] }
 0x7eb   : > { %v645_v51 = vsel %vm644_vm7, 1.0, %v634_v43  ;;  %v263_v43 = vld [vmem:[#allocation5 + $0x188] sm:$0xff] }
 0x7ec   : > { %646 = vxpose.xlu1.b32.start.end [1/1] (short) (narrow) %v645_v51, 8  ;;  %v1802_v46 = vpack.c.bf16 %v263_v43, %v262_v42  ;;  %v298_v42 = vld [vmem:[#allocation5 + $0x2a0] sm:$0xff]  ;;  %v299_v43 = vld [vmem:[#allocation5 + $0x2a8] sm:$0xff] }
 0x86c   : > { %v662_v53 = vpop.trf.xlu1 }
 0x86d   : > { %v678_v55 = vadd.f32 %v662_v53, %v645_v51  ;;  %v1805_v51 = vpack.c.bf16 %v265_v50, %v264_v49  ;;  %v266_v53 = vld [vmem:[#allocation5 + $0x1a0] sm:$0xff]  ;;  %v303_v50 = vld [vmem:[#allocation5 + $0x2c8] sm:$0xff] }
 0x86e   : > { %v302_v49 = vld [vmem:[#allocation5 + $0x2c0] sm:$0xff] }
 0x86f   : > { %vm679_vm8 = vcmp.gt.f32.partialorder %v678_v55, 0.0  ;;  %v267_v55 = vld [vmem:[#allocation5 + $0x1a8] sm:$0xff] }
 0x870   : > { %v680_v56 = vsel %vm679_vm8, 1.0, %v2148_v1 }
 0x871   : > { %v681_v57 = vsel %vm613_vm1, %v680_v56, 0.0 }
 0x872   : > { %682 = vadd.xlane.f32.xlu0 %v681_v57  ;;  %v685_v20 = vrot.slane %v681_v57, 4 }
 0x874   : > { %v686_v21 = vadd.f32 %v685_v20, %v681_v57  ;;  %v268_v57 = vld [vmem:[#allocation5 + $0x1b0] sm:$0xff]  ;;  %v1832_v20 = vpack.c.bf16 %v283_v19, %v282_v18  ;;  %v314_v18 = vld [vmem:[#allocation5 + $0x320] sm:$0xff]  ;;  %v315_v19 = vld [vmem:[#allocation5 + $0x328] sm:$0xff] }
 0x875   : > { %v1811_v59 = vpack.c.bf16 %v269_v58, %v268_v57  ;;  %v306_v57 = vld [vmem:[#allocation5 + $0x2e0] sm:$0xff]  ;;  %v307_v58 = vld [vmem:[#allocation5 + $0x2e8] sm:$0xff] }
 0x876   : > { %v687_v22 = vrot.slane %v686_v21, 2 }
 0x878   : > { %v688_v23 = vadd.f32 %v687_v22, %v686_v21  ;;  %v284_v21 = vld [vmem:[#allocation5 + $0x230] sm:$0xff]  ;;  %v285_v22 = vld [vmem:[#allocation5 + $0x238] sm:$0xff] }
 0x87a   : > { %v689_v24 = vrot.slane %v688_v23, 1 }
 0x87c   : > { %v690_v25 = vadd.f32 %v689_v24, %v688_v23  ;;  %v1835_v23 = vpack.c.bf16 %v285_v22, %v284_v21  ;;  %v286_v24 = vld [vmem:[#allocation5 + $0x240] sm:$0xff] }
 0x87d   : > { %v318_v22 = vld [vmem:[#allocation5 + $0x340] sm:$0xff] }
 0x87e   : > { %v691_v27 = vmax.f32 %v690_v25, 1.0  ;;  %v287_v25 = vld [vmem:[#allocation5 + $0x248] sm:$0xff] }
 0x8ff   : > { %v683_v26 = vpop.xlane.xlu0 %682 }
 0x900   : > { %v684_v28 = vmax.f32 %v683_v26, 1.0  ;;  %v1838_v26 = vpack.c.bf16 %v287_v25, %v286_v24  ;;  %v320_v25 = vld [vmem:[#allocation5 + $0x350] sm:$0xff] }
 0x902   : > { %1975 = vrsqrt.f32 %v684_v28  ;;  %v289_v28 = vld [vmem:[#allocation5 + $0x258] sm:$0xff] }
 0x903   : > { %1977 = vrsqrt.f32 %v691_v27  ;;  %v288_v27 = vld [vmem:[#allocation5 + $0x250] sm:$0xff] }
 0x90c   : > { %v1976_v29 = vpop.eup %1975 }
 0x90d   : > { %v693_v30 = vmul.f32 %v1976_v29, %v680_v56  ;;  %v1978_v31 = vpop.eup %1977  ;;  %v1808_v56 = vpack.c.bf16 %v267_v55, %v266_v53  ;;  %v1841_v29 = vpack.c.bf16 %v289_v28, %v288_v27  ;;  %v304_v53 = vld [vmem:[#allocation5 + $0x2d0] sm:$0xff]  ;;  %v305_v55 = vld [vmem:[#allocation5 + $0x2d8] sm:$0xff]  ;;  %v322_v28 = vld [vmem:[#allocation5 + $0x360] sm:$0xff] }
 0x90f   : > { %v695_v32 = vmul.f32 %v1978_v31, %v693_v30  ;;  %v290_v30 = vld [vmem:[#allocation5 + $0x260] sm:$0xff]  ;;  %v291_v31 = vld [vmem:[#allocation5 + $0x268] sm:$0xff] }
 0x911   : > { %1547 = vmatmul.mubr.msk.f32.vlgmr.msra.gmra.mrb[4].mxu1 %vm613_vm1, %v695_v32 }
 0x912   : > { %1586 = vmatprep.mubr.msk.f32.mxu1 %vm2147_vm0, %v2148_v1 }
 0x9e4   : > { %v765_v33 = vpop.f32.mrb[4].mxu1 }
 0x9e5   : > { %v1548_v34 = vpop.f32.mrb[5].mxu1  ;;  %1582 = vmatmul.mubr.f32.vlgmr.msra.gmra.mrb[2].mxu0 %v765_v33  ;;  %v292_v33 = vld [vmem:[#allocation5 + $0x270] sm:$0xff] }
 0x9e6   : > { %1656 = vmatprep.mubr.msk.f32.mxu0 %vm2147_vm0, %v2148_v1  ;;  %1827 = vmatpush3.bf16.msra.mxu0 %v1826_v13  ;;  %v293_v34 = vld [vmem:[#allocation5 + $0x278] sm:$0xff]  ;;  %v311_v13 = vld [vmem:[#allocation5 + $0x308] sm:$0xff] }
 0x9e7   : > { %1828 = vmatprep.subr.bf16.mxu0 %v2146_v0  ;;  %v1847_v35 = vpack.c.bf16 %v293_v34, %v292_v33 }
 0x9ea   : > { %1830 = vmatpush3.bf16.msra.mxu0 %v1829_v15  ;;  %v1874_v15 = vpack.c.bf16 %v311_v13, %v310_v12 }
 0x9eb   : > { %1831 = vmatprep.subr.bf16.mxu0 %v2146_v0 }
 0x9ee   : > { %1833 = vmatpush3.bf16.msra.mxu0 %v1832_v20  ;;  %v317_v20 = vld [vmem:[#allocation5 + $0x338] sm:$0xff] }
 0x9ef   : > { %1834 = vmatprep.subr.bf16.mxu0 %v2146_v0 }
 0x9f2   : > { %1836 = vmatpush3.bf16.msra.mxu0 %v1835_v23  ;;  %v319_v23 = vld [vmem:[#allocation5 + $0x348] sm:$0xff] }
 0x9f3   : > { %1837 = vmatprep.subr.bf16.mxu0 %v2146_v0  ;;  %v1886_v24 = vpack.c.bf16 %v319_v23, %v318_v22 }
 0x9f6   : > { %1839 = vmatpush3.bf16.msra.mxu0 %v1838_v26  ;;  %v321_v26 = vld [vmem:[#allocation5 + $0x358] sm:$0xff] }
 0x9f7   : > { %1840 = vmatprep.subr.bf16.mxu0 %v2146_v0  ;;  %v1889_v27 = vpack.c.bf16 %v321_v26, %v320_v25 }
 0x9fa   : > { %1842 = vmatpush3.bf16.msra.mxu0 %v1841_v29  ;;  %v323_v29 = vld [vmem:[#allocation5 + $0x368] sm:$0xff] }
 0x9fb   : > { %1843 = vmatprep.subr.bf16.mxu0 %v2146_v0 }
 0xab8   : > { %v839_v37 = vpop.f32.mrb[2].mxu0 }
 0xab9   : > { %v840_v38 = vadd.f32 %v839_v37, %v772_v36  ;;  %v1583_v39 = vpop.f32.mrb[3].mxu0  ;;  %v294_v36 = vld [vmem:[#allocation5 + $0x280] sm:$0xff]  ;;  %v295_v37 = vld [vmem:[#allocation5 + $0x288] sm:$0xff] }
 0xaba   : > { %v1850_v39 = vpack.c.bf16 %v295_v37, %v294_v36  ;;  %v324_v37 = vld [vmem:[#allocation5 + $0x370] sm:$0xff] }
 0xabb   : > { %v844_v40 = vmin.f32 %v840_v38, 0.0  ;;  %vm843_vm9 = vcmp.gt.f32.partialorder %v840_v38, 0.0 }
 0xabd   : > { %v845_v41 = vmul.f32 1.442695, %v844_v40  ;;  %v297_v40 = vld [vmem:[#allocation5 + $0x298] sm:$0xff] }
 0xabf   : > { %1979 = vpow2.f32 %v845_v41 }
 0xac9   : > { %v1980_v44 = vpop.eup %1979 }
 0xaca   : > { %v1337_v45 = vadd.f32 -1.0, %v1980_v44  ;;  %v1856_v44 = vpack.c.bf16 %v299_v43, %v298_v42 }
 0xacc   : > { %v848_v48 = vsel %vm843_vm9, %v840_v38, %v1337_v45  ;;  %v296_v38 = vld [vmem:[#allocation5 + $0x290] sm:$0xff] }
 0xacd   : > { %1585 = vmatpush3.msra.mxu1 %v848_v48  ;;  %v1853_v41 = vpack.c.bf16 %v297_v40, %v296_v38  ;;  %v300_v45 = vld [vmem:[#allocation5 + $0x2b0] sm:$0xff]  ;;  %v325_v38 = vld [vmem:[#allocation5 + $0x378] sm:$0xff]  ;;  %v1077_v40 = vsub.s32 7, %v2376_v52 }
 0xace   : > { %1587 = vmatmul.mubr.msk.f32.vlgmr.msra.gmra.mrb[6].mxu1 %vm613_vm1, %v695_v32  ;;  %1801 = vmatprep.subr.bf16.mxu1 %v2146_v0  ;;  %v1844_v32 = vpack.c.bf16 %v291_v31, %v290_v30  ;;  %v1892_v30 = vpack.c.bf16 %v323_v29, %v322_v28  ;;  %v1002_v31 = vsub.s32 6, %v2376_v52 }
 0xacf   : > { %1803 = vmatpush3.bf16.msra.mxu1 %v1802_v46  ;;  %1621 = vmatprep.mubr.msk.f32.mxu1 %vm2147_vm0, %v2148_v1  ;;  %v301_v46 = vld [vmem:[#allocation5 + $0x2b8] sm:$0xff] }
 0xad0   : > { %1804 = vmatprep.subr.bf16.mxu1 %v2146_v0  ;;  %1845 = vmatpush3.bf16.msra.mxu0 %v1844_v32  ;;  %v1859_v48 = vpack.c.bf16 %v301_v46, %v300_v45  ;;  %v1003_v32 = vrot.slane %v2379_v54, %v1002_v31 }
 0xad1   : > { %1846 = vmatprep.subr.bf16.mxu0 %v2146_v0 }
 0xad3   : > { %1806 = vmatpush3.bf16.msra.mxu1 %v1805_v51  ;;  %v1862_v51 = vpack.c.bf16 %v303_v50, %v302_v49 }
 0xad4   : > { %1807 = vmatprep.subr.bf16.mxu1 %v2146_v0  ;;  %1848 = vmatpush3.bf16.msra.mxu0 %v1847_v35 }
 0xad5   : > { %1873 = vmatprep.subr.bf16.mxu0 %v2146_v0 }
 0xad7   : > { %1809 = vmatpush3.bf16.msra.mxu1 %v1808_v56  ;;  %v1865_v56 = vpack.c.bf16 %v305_v55, %v304_v53 }
 0xad8   : > { %1810 = vmatprep.subr.bf16.mxu1 %v2146_v0 }
 0xadb   : > { %1812 = vmatpush3.bf16.msra.mxu1 %v1811_v59  ;;  %v1868_v59 = vpack.c.bf16 %v307_v58, %v306_v57 }
 0xadc   : > { %1813 = vmatprep.subr.bf16.mxu1 %v2146_v0 }
 0xadf   : > { %1815 = vmatpush3.bf16.msra.mxu1 %v1814_v62 }
 0xae0   : > { %1816 = vmatprep.subr.bf16.mxu1 %v2146_v0 }
 0xae3   : > { %1818 = vmatpush3.bf16.msra.mxu1 %v1817_v3 }
 0xae4   : > { %1819 = vmatprep.subr.bf16.mxu1 %v2146_v0 }
 0xae7   : > { %1821 = vmatpush3.bf16.msra.mxu1 %v1820_v6 }
 0xae8   : > { %1822 = vmatprep.subr.bf16.mxu1 %v2146_v0 }
 0xaeb   : > { %1824 = vmatpush3.bf16.msra.mxu1 %v1823_v9  ;;  %v308_v9 = vld [vmem:[#allocation5 + $0x2f0] sm:$0xff] }
 0xaec   : > { %1849 = vmatprep.subr.bf16.mxu1 %v2146_v0  ;;  %v1871_v11 = vpack.c.bf16 %v309_v10, %v308_v9 }
 0xba1   : > { %v915_v16 = vpop.f32.mrb[6].mxu1 }
 0xba2   : > { %v1588_v17 = vpop.f32.mrb[7].mxu1  ;;  %1622 = vmatmul.mubr.f32.vlgmr.msra.gmra.mrb[8].mxu1 %v915_v16  ;;  %v313_v16 = vld [vmem:[#allocation5 + $0x318] sm:$0xff] }
 0xba3   : > { %1691 = vmatprep.mubr.msk.f32.mxu1 %vm2147_vm0, %v2148_v1  ;;  %1851 = vmatpush3.bf16.msra.mxu1 %v1850_v39  ;;  %v1877_v17 = vpack.c.bf16 %v313_v16, %v312_v14  ;;  %v1895_v39 = vpack.c.bf16 %v325_v38, %v324_v37 }
 0xba4   : > { %1852 = vmatprep.subr.bf16.mxu1 %v2146_v0 }
 0xba7   : > { %1854 = vmatpush3.bf16.msra.mxu1 %v1853_v41 }
 0xba8   : > { %1855 = vmatprep.subr.bf16.mxu1 %v2146_v0 }
 0xbab   : > { %1857 = vmatpush3.bf16.msra.mxu1 %v1856_v44 }
 0xbac   : > { %1858 = vmatprep.subr.bf16.mxu1 %v2146_v0 }
 0xbaf   : > { %1860 = vmatpush3.bf16.msra.mxu1 %v1859_v48 }
 0xbb0   : > { %1861 = vmatprep.subr.bf16.mxu1 %v2146_v0 }
 0xbb3   : > { %1863 = vmatpush3.bf16.msra.mxu1 %v1862_v51 }
 0xbb4   : > { %1864 = vmatprep.subr.bf16.mxu1 %v2146_v0 }
 0xbb7   : > { %1866 = vmatpush3.bf16.msra.mxu1 %v1865_v56 }
 0xbb8   : > { %1867 = vmatprep.subr.bf16.mxu1 %v2146_v0 }
 0xbbb   : > { %1869 = vmatpush3.bf16.msra.mxu1 %v1868_v59 }
 0xbbc   : > { %1870 = vmatprep.subr.bf16.mxu1 %v2146_v0 }
 0xbbf   : > { %1872 = vmatpush3.bf16.msra.mxu1 %v1871_v11 }
 0xc75   : > { %v989_v62 = vpop.f32.mrb[8].mxu1 }
 0xc76   : > { %v990_v63 = vadd.f32 %v989_v62, %v922_v61  ;;  %v1623_v2 = vpop.f32.mrb[9].mxu1 }
 0xc78   : > { %v994_v3 = vmin.f32 %v990_v63, 0.0  ;;  %vm993_vm10 = vcmp.gt.f32.partialorder %v990_v63, 0.0 }
 0xc7a   : > { %v995_v4 = vmul.f32 1.442695, %v994_v3 }
 0xc7c   : > { %1981 = vpow2.f32 %v995_v4 }
 0xc86   : > { %v1982_v5 = vpop.eup %1981 }
 0xc87   : > { %v1339_v6 = vadd.f32 -1.0, %v1982_v5 }
 0xc89   : > { %v998_v7 = vsel %vm993_vm10, %v990_v63, %v1339_v6 }
 0xc8a   : > { %v999_v8 = vadd.f32 %v998_v7, %v2368_v47  ;;  %v1880_v47 = vpack.c.bf16 %v315_v19, %v314_v18 }
 0xc8c   : > { %1657 = vmatmul.mubr.f32.vlgmr.msra.gmra.mrb[4].mxu0 %v999_v8 }
 0xc8d   : > { %1726 = vmatprep.mubr.msk.f32.mxu0 %vm2147_vm0, %v2148_v1  ;;  %1875 = vmatpush3.bf16.msra.mxu0 %v1874_v15  ;;  %v316_v1 = vld [vmem:[#allocation5 + $0x330] sm:$0xff] }
 0xc8e   : > { %1876 = vmatprep.subr.bf16.mxu0 %v2146_v0  ;;  %v1883_v21 = vpack.c.bf16 %v317_v20, %v316_v1 }
 0xc91   : > { %1878 = vmatpush3.bf16.msra.mxu0 %v1877_v17 }
 0xc92   : > { %1879 = vmatprep.subr.bf16.mxu0 %v2146_v0 }
 0xc95   : > { %1881 = vmatpush3.bf16.msra.mxu0 %v1880_v47 }
 0xc96   : > { %1882 = vmatprep.subr.bf16.mxu0 %v2146_v0 }
 0xc99   : > { %1884 = vmatpush3.bf16.msra.mxu0 %v1883_v21 }
 0xc9a   : > { %1885 = vmatprep.subr.bf16.mxu0 %v2146_v0 }
 0xc9d   : > { %1887 = vmatpush3.bf16.msra.mxu0 %v1886_v24 }
 0xc9e   : > { %1888 = vmatprep.subr.bf16.mxu0 %v2146_v0 }
 0xca1   : > { %1890 = vmatpush3.bf16.msra.mxu0 %v1889_v27 }
 0xca2   : > { %1891 = vmatprep.subr.bf16.mxu0 %v2146_v0 }
 0xca5   : > { %1893 = vmatpush3.bf16.msra.mxu0 %v1892_v30 }
 0xca6   : > { %1894 = vmatprep.subr.bf16.mxu0 %v2146_v0  ;;  %v1078_v0 = vrot.slane %v2379_v54, %v1077_v40 }
 0xca9   : > { %1896 = vmatpush3.bf16.msra.mxu0 %v1895_v39 }
 0xd5f   : > { %v1070_v33 = vpop.f32.mrb[4].mxu0 }
 0xd60   : > { %v1071_v34 = vadd.f32 %v1070_v33, %v1003_v32  ;;  %v1658_v35 = vpop.f32.mrb[5].mxu0 }
 0xd62   : > { %v1074_v36 = vmax.f32 %v1071_v34, 0.0 }
 0xd64   : > { %1692 = vmatmul.mubr.f32.vlgmr.msra.gmra.mrb[10].mxu1 %v1074_v36 }
 0xe37   : > { %v1145_v41 = vpop.f32.mrb[10].mxu1 }
 0xe38   : > { %v1146_v42 = vadd.f32 %v1145_v41, %v1078_v0  ;;  %v1693_v43 = vpop.f32.mrb[11].mxu1 }
 0xe3a   : > { %v1149_v44 = vmax.f32 %v1146_v42, 0.0 }
 0xe3c   : > { %1727 = vmatmul.mubr.f32.vlgmr.msra.gmra.mrb[6].mxu0 %v1149_v44 }
 0xf0f   : > { %v1216_v52 = vpop.f32.mrb[6].mxu0 }
 0xf10   : > { %1220 = vst [vmem:[%s212_s18] sm:$0xff] %v1216_v52  ;;  %v1728_v54 = vpop.f32.mrb[7].mxu0 }
 0xf11   : > { %2082 = shalt.err (!%p2079_p7)
}
 0xf12   : > { %s2083_s8 = scalar_lea.hbm %s2473_s27, 128  ;;  %s2087_s10 = scalar_lea.hbm %s2517_s3, 512 }
 0xf13   : > { %p2084_p9 = scmp.ne.s32.totalorder %s2473_s27, %s2083_s8  ;;  %p2088_p0 = scmp.lt.u32.totalorder %s2473_s27, %s2517_s3 }
 0xf14   : > { %p2089_p10 = scmp.lt.u32.totalorder %s2087_s10, %s2083_s8  ;;  %p2091_p1 = scmp.lt.u32.totalorder %s2083_s8, %s2473_s27 }
 0xf15   : > { %p2085_p12 = pnand %p2084_p9, %p2283_p4 }
 0xf16   : > { %p2090_p11 = por %p2089_p10, %p2088_p0 }
 0xf17   : > { %p2086_p5 = pneg %p2085_p12 }
 0xf18   : > { %p2092_p2 = por %p2091_p1, %p2090_p11 }
 0xf1a   : > { %p2093_p6 = pnand %p2092_p2, %p2086_p5 }
 0xf1c   : > { %2096 = shalt.err (!%p2093_p6)
}
 0xf1d   : > { %1907 = dma.vmem_to_hbm [thread:$0]  (%p2283_p4), %s2468_s20, 128, %s2473_s27, %s1222_s29  }
 0xf1e PF: > { %p1929_p8 = scmp.ge.s32.totalorder %s2139_s15, 2  ;;  %s1247_s28 = sand.u32 1, %s2127_s12  }
 0xf1f   : > { %p2532_p13 = scmp.ne.s32.totalorder %s2522_s19, 0  ;;  %s1248_s22 = scalar_lea.sflag [#allocation4], %s1247_s28 }
 0xf21   : > { %p1921_p3 = pnand %p1929_p8, %p2532_p13 }
 0xf23   : > { %2122 = dma.done.wait (!%p1921_p3), %s1248_s22, 128  }
 0xf24   : > { %2124 = vsyncadd (!%p1921_p3), %s1248_s22, 4294967168  ;;  %p17_p7 = scmp.ge.s32.totalorder %s2273_s4, 6   ;;  %s2533_s12 = smov %s2131_s13 }
 0xf25   : > { %s2534_s13 = smov %s2135_s14  ;;  %s2535_s14 = smov %s2289_s7 }
 0xf26   : > { %s2536_s15 = smov %s2273_s4  ;;  %19 = sbr.rel (!%p17_p7) target bundleno = 6 (0x6), region = 85 }
 0xf2d   :  { %1253 = vsyncpa [#allocation3], 1 }
 0xf2e   :  { %1255 = vsyncpa [#allocation3 + $0x1], 1 }
 0xf2f   :  { %1256 = vsyncpa [#allocation6], 1 }
 0xf30   :  { %1257 = vsyncpa [#allocation4], 1 }
 0xf31   :  { %1259 = vsyncpa [#allocation4 + $0x1], 1 }

</bundles_post_ra>
